<compile_context>
chip_gen: v7x
topology: tpu7x:2x2x1
jax: 0.10.0
libtpu: 0.0.40
codegen_flags: <defaults>
</compile_context>

<pallas_src>
import functools

import jax
import jax.numpy as jnp
from jax.experimental import pallas as pl
from jax.experimental.pallas import tpu as pltpu


def _round_up(x, m):
    return ((x + m - 1) // m) * m


def _sublane_align(dtype):
    # f32 -> 8, bf16 -> 16, int8/fp8 -> 32 (sub-32-bit packs along sublanes).
    return 8 * max(1, 4 // jnp.dtype(dtype).itemsize)


def _pick_divisor_tile(total, candidates):
    """Largest candidate tile that divides `total` exactly (ragged reduction
    tiles are unsafe); falls back to the full dimension."""
    for c in candidates:
        if c <= total and total % c == 0:
            return c
    return total


def _block_spec(shape, index_map, buffer_count=None):
    """BlockSpec with optional N-deep pipelining; silently falls back to the
    default double-buffering if this JAX build rejects pipeline_mode."""
    if buffer_count is not None:
        try:
            return pl.BlockSpec(shape, index_map,
                                pipeline_mode=pl.Buffered(buffer_count))
        except (TypeError, AttributeError):
            pass
    return pl.BlockSpec(shape, index_map)


# ----------------------------- kernels --------------------------------------

def _fused_linear_kernel(x_ref, w_ref, b_ref, o_ref):
    # x: (TM, IN), w: (IN, N_pad), b: (1, N_pad), o: (TM, N_pad)
    acc = jnp.dot(x_ref[...], w_ref[...], preferred_element_type=jnp.float32)
    o_ref[...] = (acc + b_ref[...].astype(jnp.float32)).astype(o_ref.dtype)


def _fused_linear_kn_tiled_kernel(x_ref, w_ref, b_ref, o_ref, acc_ref):
    # grid = (M, N, K) with K last / "arbitrary"; f32 accumulator in VMEM.
    k = pl.program_id(2)

    @pl.when(k == 0)
    def _():
        acc_ref[...] = jnp.zeros_like(acc_ref)

    acc_ref[...] += jnp.dot(x_ref[...], w_ref[...],
                            preferred_element_type=jnp.float32)

    @pl.when(k == pl.num_programs(2) - 1)
    def _():
        o_ref[...] = (acc_ref[...]
                      + b_ref[...].astype(jnp.float32)).astype(o_ref.dtype)


# ----------------------- one-time parameter prep -----------------------------

def prepare_fused_params(weights, biases, dtype=None):
    """Fuse all heads into a single lane-dense weight matrix and bias row.

    weights: list of (out_i, in) arrays (PyTorch nn.Linear layout).
    biases:  list of (out_i,) arrays.
    dtype:   optional compute dtype (e.g. jnp.bfloat16) to cast params once.
    Returns (w_fused (IN, N_pad), b_fused (1, N_pad), output_sizes tuple).
    """
    in_sizes = {int(w.shape[1]) for w in weights}
    assert len(in_sizes) == 1, (
        "MultiHeadLinear applies every head to the same x; all heads must "
        "share input_size for the fused path")
    output_sizes = tuple(int(w.shape[0]) for w in weights)
    n_total = sum(output_sizes)
    n_pad = _round_up(max(n_total, 1), 128)

    w_fused = jnp.concatenate([jnp.transpose(w) for w in weights], axis=1)
    b_fused = jnp.concatenate(biases).reshape(1, n_total)
    if n_pad != n_total:
        # Zero-padded columns -> padded outputs are exactly zero (harmless).
        w_fused = jnp.pad(w_fused, ((0, 0), (0, n_pad - n_total)))
        b_fused = jnp.pad(b_fused, ((0, 0), (0, n_pad - n_total)))
    if dtype is not None:
        w_fused = w_fused.astype(dtype)
        b_fused = b_fused.astype(dtype)
    return w_fused, b_fused, output_sizes


# ----------------------------- forward --------------------------------------

# Switch to K/N-tiled weights when the fused weight would claim too much VMEM;
# sized for v7x (64 MiB physical / 32 MiB scoped default), conservative for
# v5e/v6e (128 MiB).
_VMEM_WEIGHT_TILE_THRESHOLD = 8 * 1024 * 1024
# Below this many flops, pallas_call fixed overhead dominates -> plain XLA.
_SMALL_PROBLEM_FLOPS = 1 << 20


def _pallas_fused_forward(x, w_fused, b_fused, force_tiled):
    batch, in_dim = x.shape
    n_pad = w_fused.shape[1]
    dtype = x.dtype
    itemsize = jnp.dtype(dtype).itemsize
    align = _sublane_align(dtype)

    # Batch (M) tile: up to 512 rows, but split into >= 2 grid steps whenever
    # possible so the "parallel" axis uses both TensorCores on v7x.
    if batch <= align:
        tm = batch                                  # single full-dim block
    else:
        tm = min(512, _round_up(pl.cdiv(batch, 2), align))
    m_tiles = pl.cdiv(batch, tm)

    cost = pl.CostEstimate(
        flops=2 * batch * in_dim * n_pad,
        transcendentals=0,
        bytes_accessed=(batch * in_dim + in_dim * n_pad + n_pad
                        + batch * n_pad) * itemsize)

    weight_bytes = in_dim * n_pad * itemsize
    tiled = force_tiled or weight_bytes > _VMEM_WEIGHT_TILE_THRESHOLD

    if not tiled:
        # Weight + bias resident in VMEM; x / out streamed per batch tile.
        nbuf = 3 if m_tiles >= 4 else None
        return pl.pallas_call(
            _fused_linear_kernel,
            out_shape=jax.ShapeDtypeStruct((batch, n_pad), dtype),
            grid=(m_tiles,),
            in_specs=[
                _block_spec((tm, in_dim), lambda i: (i, 0), nbuf),
                pl.BlockSpec((in_dim, n_pad), lambda i: (0, 0)),
                pl.BlockSpec((1, n_pad), lambda i: (0, 0)),
            ],
            out_specs=_block_spec((tm, n_pad), lambda i: (i, 0), nbuf),
            compiler_params=pltpu.CompilerParams(
                dimension_semantics=("parallel",)),
            cost_estimate=cost,
        )(x, w_fused, b_fused)

    # K-reduction + N tiling for large fused weights (v7x VMEM-safe).
    tk = _pick_divisor_tile(in_dim, (512, 384, 256, 128))
    tn = _pick_divisor_tile(n_pad, (512, 384, 256, 128))
    k_tiles = in_dim // tk
    n_tiles = n_pad // tn
    return pl.pallas_call(
        _fused_linear_kn_tiled_kernel,
        out_shape=jax.ShapeDtypeStruct((batch, n_pad), dtype),
        grid=(m_tiles, n_tiles, k_tiles),
        in_specs=[
            pl.BlockSpec((tm, tk), lambda i, j, k: (i, k)),
            pl.BlockSpec((tk, tn), lambda i, j, k: (k, j)),
            pl.BlockSpec((1, tn), lambda i, j, k: (0, j)),
        ],
        out_specs=pl.BlockSpec((tm, tn), lambda i, j, k: (i, j)),
        scratch_shapes=[pltpu.VMEM((tm, tn), jnp.float32)],
        compiler_params=pltpu.CompilerParams(
            dimension_semantics=("parallel", "parallel", "arbitrary")),
        cost_estimate=cost,
    )(x, w_fused, b_fused)


@functools.partial(
    jax.jit,
    static_argnames=("output_sizes", "use_pallas", "force_tiled", "split_heads"))
def multi_head_linear_fused(x, w_fused, b_fused, output_sizes,
                            use_pallas=None, force_tiled=False,
                            split_heads=True):
    """Forward pass matching MultiHeadLinear.forward: a list of per-head
    predictions, each (batch, out_size_i).  split_heads=False returns the
    fused (batch, sum(out)) slab instead (single slice, no per-head copies)."""
    batch, in_dim = x.shape
    n_pad = w_fused.shape[1]
    if x.dtype != w_fused.dtype:
        x = x.astype(w_fused.dtype)     # one cast (e.g. bf16 params)

    flops = 2 * batch * in_dim * n_pad
    if use_pallas is None:
        use_pallas = flops >= _SMALL_PROBLEM_FLOPS

    if use_pallas:
        out = _pallas_fused_forward(x, w_fused, b_fused, force_tiled)
    else:
        # Tiny problems: pallas_call launch/DMA overhead dominates; plain XLA.
        out = (jnp.dot(x, w_fused, preferred_element_type=jnp.float32)
               + b_fused.astype(jnp.float32)).astype(x.dtype)

    n_total = sum(output_sizes)
    if not split_heads:
        return jax.lax.slice(out, (0, 0), (batch, n_total))

    predictions, offset = [], 0
    for out_size in output_sizes:
        predictions.append(
            jax.lax.slice(out, (0, offset), (batch, offset + out_size)))
        offset += out_size
    return predictions


def init_params(key, input_sizes, output_sizes, dtype=jnp.float32):
    """Deterministic init matching nn.Linear default
    (uniform in [-1/sqrt(in), 1/sqrt(in)]); W (out, in), b (out,)."""
    weights, biases = [], []
    for in_size, out_size in zip(input_sizes, output_sizes):
        key, kw, kb = jax.random.split(key, 3)
        bound = 1.0 / (in_size ** 0.5)
        weights.append(
            jax.random.uniform(kw, (out_size, in_size), dtype, -bound, bound))
        biases.append(
            jax.random.uniform(kb, (out_size,), dtype, -bound, bound))
    return weights, biases


if __name__ == "__main__":
    key = jax.random.PRNGKey(0)

    # --- Test 1: module-like small shapes, fused single-shot kernel ---------
    batch = 8
    input_sizes = [32, 32, 32]
    output_sizes = [16, 8, 24]
    key, kx = jax.random.split(key)
    x = jax.random.normal(kx, (batch, input_sizes[0]), jnp.float32)
    weights, biases = init_params(key, input_sizes, output_sizes)
    w_fused, b_fused, out_sizes = prepare_fused_params(weights, biases)

    preds = multi_head_linear_fused(x, w_fused, b_fused, out_sizes,
                                    use_pallas=True)
    preds = [jax.block_until_ready(p) for p in preds]
    for p, W, b, o in zip(preds, weights, biases, output_sizes):
        ref = x @ W.T + b
        assert p.shape == (batch, o), p.shape
        assert jnp.allclose(p, ref, atol=1e-5, rtol=1e-5), "mismatch (test 1)"

    # --- Test 2: ragged batch (no hot-path jnp.pad; Pallas handles last block)
    batch2 = 13
    key, kx2 = jax.random.split(key)
    x2 = jax.random.normal(kx2, (batch2, input_sizes[0]), jnp.float32)
    preds2 = multi_head_linear_fused(x2, w_fused, b_fused, out_sizes,
                                     use_pallas=True)
    preds2 = [jax.block_until_ready(p) for p in preds2]
    for p, W, b, o in zip(preds2, weights, biases, output_sizes):
        ref = x2 @ W.T + b
        assert p.shape == (batch2, o), p.shape
        assert jnp.allclose(p, ref, atol=1e-5, rtol=1e-5), "mismatch (test 2)"

    # --- Test 3: K/N-tiled path (VMEM-safe variant for large fused weights) -
    batch3 = 64
    in3 = [1024, 1024, 1024]
    out3 = [192, 320, 256]          # sum = 768 -> tn=384, tk=512 -> K grid of 2
    key, kx3 = jax.random.split(key)
    x3 = jax.random.normal(kx3, (batch3, in3[0]), jnp.float32)
    w3, b3 = init_params(key, in3, out3)
    wf3, bf3, os3 = prepare_fused_params(w3, b3)
    preds3 = multi_head_linear_fused(x3, wf3, bf3, os3,
                                     use_pallas=True, force_tiled=True)
    preds3 = [jax.block_until_ready(p) for p in preds3]
    for p, W, b, o in zip(preds3, w3, b3, out3):
        ref = jnp.dot(x3, W.T, precision=jax.lax.Precision.HIGHEST) + b
        assert p.shape == (batch3, o), p.shape
        assert jnp.allclose(p, ref, atol=1e-3, rtol=1e-3), "mismatch (test 3)"

    print("KERNEL_OK")
</pallas_src>

<mosaic_0001>
module attributes {stable_mosaic.version = 11 : i64} {
  func.func @_fused_linear_kernel(%arg0: i32, %arg1: memref<8x32xf32, #tpu.memory_space<vmem>>, %arg2: memref<32x128xf32, #tpu.memory_space<vmem>>, %arg3: memref<1x128xf32, #tpu.memory_space<vmem>>, %arg4: memref<8x128xf32, #tpu.memory_space<vmem>>) attributes {dimension_semantics = [#tpu.dimension_semantics<parallel>], iteration_bounds = array<i64: 1>, scalar_prefetch = 0 : i64, scratch_operands = 0 : i64, tpu.core_type = #tpu.core_type<tc>, window_params = [{transform_indices = @transform_0, window_bounds = array<i64: 8, 32>}, {pipeline_mode = #tpu.pipeline_mode<synchronous>, transform_indices = @transform_1, window_bounds = array<i64: 32, 128>}, {pipeline_mode = #tpu.pipeline_mode<synchronous>, transform_indices = @transform_2, window_bounds = array<i64: 1, 128>}, {transform_indices = @transform_3, window_bounds = array<i64: 8, 128>}]} {
    %c0 = arith.constant 0 : index
    %c0_0 = arith.constant 0 : index
    %0 = vector.load %arg1[%c0, %c0_0] : memref<8x32xf32, #tpu.memory_space<vmem>>, vector<8x32xf32>
    %c0_1 = arith.constant 0 : index
    %c0_2 = arith.constant 0 : index
    %1 = vector.load %arg2[%c0_1, %c0_2] : memref<32x128xf32, #tpu.memory_space<vmem>>, vector<32x128xf32>
    %cst = arith.constant dense<0.000000e+00> : vector<8x128xf32>
    %2 = tpu.matmul %0, %1, %cst {dimension_numbers = #tpu.dot_dimension_numbers<[1], [0], [0], [1], [0, 0, 1, 1], [], []>} : vector<8x32xf32>, vector<32x128xf32>, vector<8x128xf32> -> vector<8x128xf32>
    %c0_3 = arith.constant 0 : index
    %c0_4 = arith.constant 0 : index
    %3 = vector.load %arg3[%c0_3, %c0_4] : memref<1x128xf32, #tpu.memory_space<vmem>>, vector<1x128xf32>
    %4 = vector.broadcast %3 : vector<1x128xf32> to vector<8x128xf32>
    %5 = arith.addf %2, %4 : vector<8x128xf32>
    %c0_5 = arith.constant 0 : index
    %c0_6 = arith.constant 0 : index
    %6 = vector.load %arg4[%c0_5, %c0_6] : memref<8x128xf32, #tpu.memory_space<vmem>>, vector<8x128xf32>
    tpu.vector_store %arg4[%c0_5, %c0_6], %5 {strides = array<i32>} : memref<8x128xf32, #tpu.memory_space<vmem>>, vector<8x128xf32>,
    return
  }
  func.func @transform_0(%arg0: i32) -> (i32, i32) {
    %c0_i32 = arith.constant 0 : i32
    %c0_i32_0 = arith.constant 0 : i32
    return %arg0, %c0_i32 : i32, i32
  }
  func.func @transform_1(%arg0: i32) -> (i32, i32) {
    %c0_i32 = arith.constant 0 : i32
    %c0_i32_0 = arith.constant 0 : i32
    %c0_i32_1 = arith.constant 0 : i32
    return %c0_i32, %c0_i32_0 : i32, i32
  }
  func.func @transform_2(%arg0: i32) -> (i32, i32) {
    %c0_i32 = arith.constant 0 : i32
    %c0_i32_0 = arith.constant 0 : i32
    %c0_i32_1 = arith.constant 0 : i32
    return %c0_i32, %c0_i32_0 : i32, i32
  }
  func.func @transform_3(%arg0: i32) -> (i32, i32) {
    %c0_i32 = arith.constant 0 : i32
    %c0_i32_0 = arith.constant 0 : i32
    return %arg0, %c0_i32 : i32, i32
  }
}

</mosaic_0001>

<bundles_post_ra>
// kernel: multi_head_linear_fused.1
= control target key start
LH: loop header
LB: loop body
LE: loop exit
PB: predicated region body
PF: predicated region fallthrough
CT: control target
= control target key end

     0   :  { %8 = vsyncpa [#allocation3], 0  ;;  %s276_s0 = inlined_call_operand.hbm [shape: f32[8,32], index: 0, kind: input, shape index: {}]   ;;  %s277_s1 = inlined_call_operand.hbm [shape: f32[32,128], index: 1, kind: input, shape index: {}]   ;;  %s278_s2 = inlined_call_operand.vmem [shape: f32[1,128], index: 2, kind: input, shape index: {}]   ;;  %s279_s3 = inlined_call_operand.vmem [shape: f32[8,128], index: 3, kind: output, shape index: {}]  }
   0x1   :  { %9 = vsyncpa [#allocation5], 0  ;;  %s212_s12 = smov [#allocation2]   ;;  %s213_s14 = smov [#allocation4]  }
   0x2   :  { %s16_s13 = sshll.u32 %s212_s12, 4  ;;  %s25_s15 = sshll.u32 %s213_s14, 4  ;;  %s17_s13 = int_to_ptr.vmem [resolvable:$true] %s16_s13  ;;  %s239_s15 = int_to_ptr.vmem [resolvable:$true] %s25_s15 }
   0x3   :  { %s164_s18 = scalar_lea.hbm %s276_s0, 128 }
   0x4   :  { %p165_p0 = scmp.ne.s32.totalorder %s276_s0, %s164_s18  ;;  %p168_p1 = scmp.lt.u32.totalorder %s164_s18, %s276_s0 }
   0x6   :  { %p170_p2 = pnand %p168_p1, %p165_p0 }
   0x8   :  { %173 = shalt.err (!%p170_p2)
}
   0x9   :  { %s174_s23 = scalar_lea.vmem %s17_s13, 128  ;;  %p179_p4 = scmp.lt.s32.totalorder %s17_s13, %s17_s13 }
   0xa   :  { %p175_p3 = scmp.ne.s32.totalorder %s17_s13, %s174_s23  ;;  %p180_p5 = scmp.lt.s32.totalorder %s174_s23, %s174_s23 }
   0xc   :  { %p181_p6 = por %p180_p5, %p179_p4 }
   0xe   :  { %p182_p7 = pnand %p181_p6, %p175_p3 }
  0x10   :  { %185 = shalt.err (!%p182_p7)
}
  0x11   :  { %19 = dma.hbm_to_vmem [thread:$0]  %s276_s0, 128, %s17_s13, [#allocation3]  }
  0x12   :  { %s186_s28 = scalar_lea.hbm %s277_s1, 512 }
  0x13   :  { %p187_p8 = scmp.ne.s32.totalorder %s277_s1, %s186_s28  ;;  %p190_p9 = scmp.lt.u32.totalorder %s186_s28, %s277_s1 }
  0x15   :  { %p192_p10 = pnand %p190_p9, %p187_p8 }
  0x17   :  { %195 = shalt.err (!%p192_p10)
}
  0x18   :  { %s196_s6 = scalar_lea.vmem %s239_s15, 512  ;;  %p201_p12 = scmp.lt.s32.totalorder %s239_s15, %s239_s15 }
  0x19   :  { %p197_p11 = scmp.ne.s32.totalorder %s239_s15, %s196_s6  ;;  %p202_p13 = scmp.lt.s32.totalorder %s196_s6, %s196_s6 }
  0x1b   :  { %p203_p0 = por %p202_p13, %p201_p12 }
  0x1d   :  { %p204_p1 = pnand %p203_p0, %p197_p11 }
  0x1f   :  { %207 = shalt.err (!%p204_p1)
}
  0x20   :  { %s214_s0 = smov 128   ;;  %s215_s7 = smov 8  }
  0x21   :  { %31 = dma.hbm_to_vmem [thread:$0]  %s277_s1, 512, %s239_s15, [#allocation5], %s214_s0, %s214_s0, %s215_s7  }
  0x22   :  { %208 = dma.done.wait [#allocation3], 128  }
  0x23   :  { %209 = vsyncadd [#allocation3], 4294967168 }
  0x24   :  { %210 = dma.done.wait [#allocation5], 512  }
  0x25   :  { %211 = vsyncadd [#allocation5], 4294966784  ;;  %v216_v0 = vmov 0.0|0.0   ;;  %vm217_vm0 = vmmov 0   ;;  %v218_v1 = vmov 0.0   ;;  %v41_v2 = vld [vmem:[#allocation4] sm:$0xff] }
  0x26   :  { %151 = vmatprep.subr.bf16.mxu0 %v216_v0  ;;  %148 = vmatprep.mubr.msk.f32.mxu0 %vm217_vm0, %v218_v1  ;;  %v42_v3 = vld [vmem:[#allocation4 + $0x8] sm:$0xff]  ;;  %v43_v4 = vld [vmem:[#allocation4 + $0x10] sm:$0xff]  ;;  %v44_v6 = vld [vmem:[#allocation4 + $0x18] sm:$0xff]  ;;  %vm52_vm1 = vcmask 261120  }
  0x27   :  { %v152_v5 = vpack.c.bf16 %v42_v3, %v41_v2  ;;  %v155_v7 = vpack.c.bf16 %v44_v6, %v43_v4  ;;  %v40_v8 = vld [vmem:[#allocation2] sm:$0xff]  ;;  %v133_v9 = vld [vmem:[%s278_s2] ss:$0 sm:$0xff] }
  0x29   :  { %153 = vmatpush3.bf16.msra.mxu0 %v152_v5 }
  0x2a   :  { %154 = vmatprep.subr.bf16.mxu0 %v216_v0 }
  0x2d   :  { %156 = vmatpush3.bf16.msra.mxu0 %v155_v7 }
  0x30   :  { %149 = vmatmul.mubr.msk.f32.vlgmr.msra.gmra.mrb[0].mxu0 %vm52_vm1, %v40_v8 }
 0x103   :  { %v122_v10 = vpop.f32.mrb[0].mxu0 }
 0x104   :  { %v123_v11 = vadd.f32 %v133_v9, %v122_v10  ;;  %v150_v12 = vpop.f32.mrb[1].mxu0 }
 0x106   :  { %126 = vst [vmem:[%s279_s3] sm:$0xff] %v123_v11 }
 0x107   :  { %131 = vsyncpa [#allocation3], 1 }
 0x108   :  { %132 = vsyncpa [#allocation5], 1 }

</bundles_post_ra>
